<compile_context>
chip_gen: v5e
topology: v5e:2x2
jax: 0.10.0
libtpu: 0.0.40
codegen_flags: <defaults>
</compile_context>

<pallas_src>
import jax
import jax.numpy as jnp
from jax.experimental import pallas as pl
from jax.experimental.pallas import tpu as pltpu

IN_DIM = 100
HID_DIM = 200
OUT_DIM = 784

IN_PAD = 128    # 100 -> 1*128
HID_PAD = 256   # 200 -> 2*128
OUT_PAD = 896   # 784 -> 7*128

LN_EPS = 1e-5
LRELU_SLOPE = 0.02
DEFAULT_TB = 256  # batch tile (multiple of 8)


def _round_up(n, m):
    return ((n + m - 1) // m) * m


def generator_kernel(x_ref, w1_ref, b1_ref, gamma_ref, beta_ref, w2_ref, b2_ref, o_ref):
    # ---- Linear(100 -> 200), padded to (128 -> 256), bf16 operands / f32 acc ----
    h = jnp.dot(x_ref[...], w1_ref[...], preferred_element_type=jnp.float32)  # (TB, 256) f32
    h = h + b1_ref[...]                                                       # padded cols stay 0

    # ---- LeakyReLU(0.02) ----
    h = jnp.where(h >= 0, h, LRELU_SLOPE * h)                                 # LeakyReLU(0) == 0

    # ---- LayerNorm over the true 200 features ----
    # Padded hidden lanes are exactly zero, so plain sums over 256 lanes are exact;
    # divide explicitly by HID_DIM (200), NOT by the padded width.
    inv_n = 1.0 / HID_DIM
    s = jnp.sum(h, axis=-1, keepdims=True)
    ss = jnp.sum(h * h, axis=-1, keepdims=True)
    mean = s * inv_n
    var = ss * inv_n - mean * mean
    inv_std = jax.lax.rsqrt(var + LN_EPS)
    # Padded lanes: (0 - mean)*inv_std*gamma_pad + beta_pad = 0 since gamma/beta padding is 0.
    hn = (h - mean) * inv_std * gamma_ref[...] + beta_ref[...]                # (TB, 256) f32

    # ---- Linear(200 -> 784), padded to (256 -> 896), bf16 operands / f32 acc ----
    y = jnp.dot(hn.astype(jnp.bfloat16), w2_ref[...],
                preferred_element_type=jnp.float32)                           # (TB, 896) f32
    y = y + b2_ref[...]

    # ---- Sigmoid: exp + approx reciprocal hit the (otherwise idle) EUP slot ----
    o_ref[...] = pl.reciprocal(1.0 + jnp.exp(-y), approx=True).astype(o_ref.dtype)


def pad_params(params):
    """One-time padding / dtype prep of the PyTorch-layout params for the kernel.

    Weights become bf16 [in_pad, out_pad]; biases / LN affine stay f32 (1, out_pad).
    All padding is zeros so the padded lanes never contribute to the real outputs.
    """
    w1, b1, gamma, beta, w2, b2 = params
    w1p = jnp.zeros((IN_PAD, HID_PAD), jnp.float32).at[:IN_DIM, :HID_DIM].set(w1)
    b1p = jnp.zeros((1, HID_PAD), jnp.float32).at[:, :HID_DIM].set(b1)
    gp = jnp.zeros((1, HID_PAD), jnp.float32).at[:, :HID_DIM].set(gamma)
    bp = jnp.zeros((1, HID_PAD), jnp.float32).at[:, :HID_DIM].set(beta)
    w2p = jnp.zeros((HID_PAD, OUT_PAD), jnp.float32).at[:HID_DIM, :OUT_DIM].set(w2)
    b2p = jnp.zeros((1, OUT_PAD), jnp.float32).at[:, :OUT_DIM].set(b2)
    return (w1p.astype(jnp.bfloat16), b1p, gp, bp, w2p.astype(jnp.bfloat16), b2p)


def generator_forward(x, padded_params, tb=DEFAULT_TB):
    """x: (B, 100) float32 -> (B, 784) float32. `padded_params` from pad_params()."""
    w1, b1, gamma, beta, w2, b2 = padded_params
    B = x.shape[0]
    tb = min(tb, _round_up(B, 8))      # small batches get a single small tile
    Bp = _round_up(B, tb)

    # Pad batch + input features, cast matmul operand to bf16 (halves input DMA).
    xp = jnp.zeros((Bp, IN_PAD), jnp.bfloat16).at[:B, :IN_DIM].set(x.astype(jnp.bfloat16))

    out = pl.pallas_call(
        generator_kernel,
        out_shape=jax.ShapeDtypeStruct((Bp, OUT_PAD), jnp.float32),
        grid=(Bp // tb,),
        in_specs=[
            pl.BlockSpec((tb, IN_PAD), lambda i: (i, 0)),        # x: tiled over batch
            pl.BlockSpec((IN_PAD, HID_PAD), lambda i: (0, 0)),   # W1: resident
            pl.BlockSpec((1, HID_PAD), lambda i: (0, 0)),        # b1
            pl.BlockSpec((1, HID_PAD), lambda i: (0, 0)),        # gamma
            pl.BlockSpec((1, HID_PAD), lambda i: (0, 0)),        # beta
            pl.BlockSpec((HID_PAD, OUT_PAD), lambda i: (0, 0)),  # W2: resident
            pl.BlockSpec((1, OUT_PAD), lambda i: (0, 0)),        # b2
        ],
        out_specs=pl.BlockSpec((tb, OUT_PAD), lambda i: (i, 0)),
        compiler_params=pltpu.CompilerParams(
            dimension_semantics=("parallel",),   # megacore: shard batch tiles across TCs
        ),
    )(xp, w1, b1, gamma, beta, w2, b2)

    return out[:B, :OUT_DIM]


def init_params(key):
    """Deterministic init mirroring PyTorch defaults (uniform +-1/sqrt(fan_in) for Linear,
    ones/zeros for LayerNorm). Weights stored as [in, out]."""
    k1, k2, k3, k4 = jax.random.split(key, 4)
    bound1 = 1.0 / jnp.sqrt(IN_DIM)
    w1 = jax.random.uniform(k1, (IN_DIM, HID_DIM), jnp.float32, -bound1, bound1)
    b1 = jax.random.uniform(k2, (1, HID_DIM), jnp.float32, -bound1, bound1)
    gamma = jnp.ones((1, HID_DIM), jnp.float32)
    beta = jnp.zeros((1, HID_DIM), jnp.float32)
    bound2 = 1.0 / jnp.sqrt(HID_DIM)
    w2 = jax.random.uniform(k3, (HID_DIM, OUT_DIM), jnp.float32, -bound2, bound2)
    b2 = jax.random.uniform(k4, (1, OUT_DIM), jnp.float32, -bound2, bound2)
    return (w1, b1, gamma, beta, w2, b2)


def reference_forward(x, params):
    w1, b1, gamma, beta, w2, b2 = params
    h = x @ w1 + b1
    h = jnp.where(h >= 0, h, LRELU_SLOPE * h)
    mean = jnp.mean(h, axis=-1, keepdims=True)
    var = jnp.mean((h - mean) ** 2, axis=-1, keepdims=True)
    h = (h - mean) / jnp.sqrt(var + LN_EPS) * gamma + beta
    return jax.nn.sigmoid(h @ w2 + b2)


if __name__ == "__main__":
    key = jax.random.PRNGKey(0)
    kx, kp = jax.random.split(key)
    batch = 8
    x = jax.random.normal(kx, (batch, IN_DIM), jnp.float32)
    params = init_params(kp)
    padded = pad_params(params)   # one-time padding / bf16 cast of the weights

    out = generator_forward(x, padded)
    out = jax.block_until_ready(out)

    ref = reference_forward(x, params)
    assert out.shape == (batch, OUT_DIM), out.shape
    # Tolerance loosened vs the pure-f32 version: bf16 matmul operands + approx
    # reciprocal in the sigmoid introduce ~1e-3 level absolute error on (0,1) outputs.
    max_err = float(jnp.max(jnp.abs(out - ref)))
    assert jnp.allclose(out, ref, atol=2e-2, rtol=2e-2), max_err
    print("KERNEL_OK")
</pallas_src>

<mosaic_0001>
module attributes {stable_mosaic.version = 11 : i64} {
  func.func @generator_kernel(%arg0: i32, %arg1: memref<8x128xbf16, #tpu.memory_space<vmem>>, %arg2: memref<128x256xbf16, #tpu.memory_space<vmem>>, %arg3: memref<1x256xf32, #tpu.memory_space<vmem>>, %arg4: memref<1x256xf32, #tpu.memory_space<vmem>>, %arg5: memref<1x256xf32, #tpu.memory_space<vmem>>, %arg6: memref<256x896xbf16, #tpu.memory_space<vmem>>, %arg7: memref<1x896xf32, #tpu.memory_space<vmem>>, %arg8: memref<8x896xf32, #tpu.memory_space<vmem>>) attributes {dimension_semantics = [#tpu.dimension_semantics<parallel>], iteration_bounds = array<i64: 1>, scalar_prefetch = 0 : i64, scratch_operands = 0 : i64, tpu.core_type = #tpu.core_type<tc>, window_params = [{transform_indices = @transform_0, window_bounds = array<i64: 8, 128>}, {pipeline_mode = #tpu.pipeline_mode<synchronous>, transform_indices = @transform_1, window_bounds = array<i64: 128, 256>}, {pipeline_mode = #tpu.pipeline_mode<synchronous>, transform_indices = @transform_2, window_bounds = array<i64: 1, 256>}, {pipeline_mode = #tpu.pipeline_mode<synchronous>, transform_indices = @transform_3, window_bounds = array<i64: 1, 256>}, {pipeline_mode = #tpu.pipeline_mode<synchronous>, transform_indices = @transform_4, window_bounds = array<i64: 1, 256>}, {pipeline_mode = #tpu.pipeline_mode<synchronous>, transform_indices = @transform_5, window_bounds = array<i64: 256, 896>}, {pipeline_mode = #tpu.pipeline_mode<synchronous>, transform_indices = @transform_6, window_bounds = array<i64: 1, 896>}, {transform_indices = @transform_7, window_bounds = array<i64: 8, 896>}]} {
    %c0 = arith.constant 0 : index
    %c0_0 = arith.constant 0 : index
    %0 = vector.load %arg1[%c0, %c0_0] : memref<8x128xbf16, #tpu.memory_space<vmem>>, vector<8x128xbf16>
    %c0_1 = arith.constant 0 : index
    %c0_2 = arith.constant 0 : index
    %1 = vector.load %arg2[%c0_1, %c0_2] : memref<128x256xbf16, #tpu.memory_space<vmem>>, vector<128x256xbf16>
    %cst = arith.constant dense<0.000000e+00> : vector<8x256xf32>
    %2 = tpu.matmul %0, %1, %cst {dimension_numbers = #tpu.dot_dimension_numbers<[1], [0], [0], [1], [0, 0, 1, 1], [], []>} : vector<8x128xbf16>, vector<128x256xbf16>, vector<8x256xf32> -> vector<8x256xf32>
    %c0_3 = arith.constant 0 : index
    %c0_4 = arith.constant 0 : index
    %3 = vector.load %arg3[%c0_3, %c0_4] : memref<1x256xf32, #tpu.memory_space<vmem>>, vector<1x256xf32>
    %4 = vector.broadcast %3 : vector<1x256xf32> to vector<8x256xf32>
    %5 = arith.addf %2, %4 : vector<8x256xf32>
    %cst_5 = arith.constant 0.000000e+00 : f32
    %6 = vector.broadcast %cst_5 : f32 to vector<8x256xf32>
    %7 = arith.cmpf oge, %5, %6 : vector<8x256xf32>
    %cst_6 = arith.constant 2.000000e-02 : f32
    %8 = vector.broadcast %cst_6 : f32 to vector<8x256xf32>
    %9 = arith.mulf %8, %5 : vector<8x256xf32>
    %10 = arith.select %7, %5, %9 : vector<8x256xi1>, vector<8x256xf32>
    %cst_7 = arith.constant dense<0.000000e+00> : vector<8xf32>
    %11 = vector.multi_reduction <add>, %10, %cst_7 [1] : vector<8x256xf32> to vector<8xf32>
    %12 = vector.shape_cast %11 : vector<8xf32> to vector<8x1xf32>
    %13 = arith.mulf %10, %10 : vector<8x256xf32>
    %cst_8 = arith.constant dense<0.000000e+00> : vector<8xf32>
    %14 = vector.multi_reduction <add>, %13, %cst_8 [1] : vector<8x256xf32> to vector<8xf32>
    %15 = vector.shape_cast %14 : vector<8xf32> to vector<8x1xf32>
    %cst_9 = arith.constant 5.000000e-03 : f32
    %16 = vector.broadcast %cst_9 : f32 to vector<8x1xf32>
    %17 = arith.mulf %12, %16 : vector<8x1xf32>
    %cst_10 = arith.constant 5.000000e-03 : f32
    %18 = vector.broadcast %cst_10 : f32 to vector<8x1xf32>
    %19 = arith.mulf %15, %18 : vector<8x1xf32>
    %20 = arith.mulf %17, %17 : vector<8x1xf32>
    %21 = arith.subf %19, %20 : vector<8x1xf32>
    %cst_11 = arith.constant 9.99999974E-6 : f32
    %22 = vector.broadcast %cst_11 : f32 to vector<8x1xf32>
    %23 = arith.addf %21, %22 : vector<8x1xf32>
    %24 = math.rsqrt %23 : vector<8x1xf32>
    %25 = vector.broadcast %17 : vector<8x1xf32> to vector<8x256xf32>
    %26 = arith.subf %10, %25 : vector<8x256xf32>
    %27 = vector.broadcast %24 : vector<8x1xf32> to vector<8x256xf32>
    %28 = arith.mulf %26, %27 : vector<8x256xf32>
    %c0_12 = arith.constant 0 : index
    %c0_13 = arith.constant 0 : index
    %29 = vector.load %arg4[%c0_12, %c0_13] : memref<1x256xf32, #tpu.memory_space<vmem>>, vector<1x256xf32>
    %30 = vector.broadcast %29 : vector<1x256xf32> to vector<8x256xf32>
    %31 = arith.mulf %28, %30 : vector<8x256xf32>
    %c0_14 = arith.constant 0 : index
    %c0_15 = arith.constant 0 : index
    %32 = vector.load %arg5[%c0_14, %c0_15] : memref<1x256xf32, #tpu.memory_space<vmem>>, vector<1x256xf32>
    %33 = vector.broadcast %32 : vector<1x256xf32> to vector<8x256xf32>
    %34 = arith.addf %31, %33 : vector<8x256xf32>
    %35 = arith.truncf %34 : vector<8x256xf32> to vector<8x256xbf16>
    %c0_16 = arith.constant 0 : index
    %c0_17 = arith.constant 0 : index
    %36 = vector.load %arg6[%c0_16, %c0_17] : memref<256x896xbf16, #tpu.memory_space<vmem>>, vector<256x896xbf16>
    %cst_18 = arith.constant dense<0.000000e+00> : vector<8x896xf32>
    %37 = tpu.matmul %35, %36, %cst_18 {dimension_numbers = #tpu.dot_dimension_numbers<[1], [0], [0], [1], [0, 0, 1, 1], [], []>} : vector<8x256xbf16>, vector<256x896xbf16>, vector<8x896xf32> -> vector<8x896xf32>
    %c0_19 = arith.constant 0 : index
    %c0_20 = arith.constant 0 : index
    %38 = vector.load %arg7[%c0_19, %c0_20] : memref<1x896xf32, #tpu.memory_space<vmem>>, vector<1x896xf32>
    %39 = vector.broadcast %38 : vector<1x896xf32> to vector<8x896xf32>
    %40 = arith.addf %37, %39 : vector<8x896xf32>
    %cst_21 = arith.constant 0.000000e+00 : f32
    %41 = vector.broadcast %cst_21 : f32 to vector<8x896xf32>
    %42 = arith.subf %41, %40 : vector<8x896xf32>
    %43 = math.exp %42 : vector<8x896xf32>
    %cst_22 = arith.constant 1.000000e+00 : f32
    %44 = vector.broadcast %cst_22 : f32 to vector<8x896xf32>
    %45 = arith.addf %44, %43 : vector<8x896xf32>
    %46 = tpu.reciprocal %45 {approx = true} : vector<8x896xf32> -> vector<8x896xf32>
    %c0_23 = arith.constant 0 : index
    %c0_24 = arith.constant 0 : index
    %47 = vector.load %arg8[%c0_23, %c0_24] : memref<8x896xf32, #tpu.memory_space<vmem>>, vector<8x896xf32>
    tpu.vector_store %arg8[%c0_23, %c0_24], %46 {strides = array<i32>} : memref<8x896xf32, #tpu.memory_space<vmem>>, vector<8x896xf32>,
    return
  }
  func.func @transform_0(%arg0: i32) -> (i32, i32) {
    %c0_i32 = arith.constant 0 : i32
    %c0_i32_0 = arith.constant 0 : i32
    return %arg0, %c0_i32 : i32, i32
  }
  func.func @transform_1(%arg0: i32) -> (i32, i32) {
    %c0_i32 = arith.constant 0 : i32
    %c0_i32_0 = arith.constant 0 : i32
    %c0_i32_1 = arith.constant 0 : i32
    return %c0_i32, %c0_i32_0 : i32, i32
  }
  func.func @transform_2(%arg0: i32) -> (i32, i32) {
    %c0_i32 = arith.constant 0 : i32
    %c0_i32_0 = arith.constant 0 : i32
    %c0_i32_1 = arith.constant 0 : i32
    return %c0_i32, %c0_i32_0 : i32, i32
  }
  func.func @transform_3(%arg0: i32) -> (i32, i32) {
    %c0_i32 = arith.constant 0 : i32
    %c0_i32_0 = arith.constant 0 : i32
    %c0_i32_1 = arith.constant 0 : i32
    return %c0_i32, %c0_i32_0 : i32, i32
  }
  func.func @transform_4(%arg0: i32) -> (i32, i32) {
    %c0_i32 = arith.constant 0 : i32
    %c0_i32_0 = arith.constant 0 : i32
    %c0_i32_1 = arith.constant 0 : i32
    return %c0_i32, %c0_i32_0 : i32, i32
  }
  func.func @transform_5(%arg0: i32) -> (i32, i32) {
    %c0_i32 = arith.constant 0 : i32
    %c0_i32_0 = arith.constant 0 : i32
    %c0_i32_1 = arith.constant 0 : i32
    return %c0_i32, %c0_i32_0 : i32, i32
  }
  func.func @transform_6(%arg0: i32) -> (i32, i32) {
    %c0_i32 = arith.constant 0 : i32
    %c0_i32_0 = arith.constant 0 : i32
    %c0_i32_1 = arith.constant 0 : i32
    return %c0_i32, %c0_i32_0 : i32, i32
  }
  func.func @transform_7(%arg0: i32) -> (i32, i32) {
    %c0_i32 = arith.constant 0 : i32
    %c0_i32_0 = arith.constant 0 : i32
    return %arg0, %c0_i32 : i32, i32
  }
}

</mosaic_0001>

<bundles_post_ra>
// kernel: tpu_custom_call.1
= control target key start
LH: loop header
LB: loop body
LE: loop exit
PB: predicated region body
PF: predicated region fallthrough
CT: control target
= control target key end

     0   :  { %12 = vsyncpa [#allocation3], 0  ;;  %s2230_s0 = inlined_call_operand.hbm [shape: bf16[8,128], index: 0, kind: input, shape index: {}]   ;;  %s2231_s1 = inlined_call_operand.hbm [shape: bf16[128,256], index: 1, kind: input, shape index: {}]   ;;  %s2232_s2 = inlined_call_operand.hbm [shape: f32[1,256], index: 2, kind: input, shape index: {}]   ;;  %s2233_s3 = inlined_call_operand.vmem [shape: f32[1,256], index: 3, kind: input, shape index: {}]   ;;  %s2234_s4 = inlined_call_operand.hbm [shape: f32[1,256], index: 4, kind: input, shape index: {}]   ;;  %s2235_s5 = inlined_call_operand.hbm [shape: bf16[256,896], index: 5, kind: input, shape index: {}]   ;;  %s2236_s6 = inlined_call_operand.hbm [shape: f32[1,896], index: 6, kind: input, shape index: {}]   ;;  %s2237_s7 = inlined_call_operand.hbm [shape: f32[8,896], index: 7, kind: output, shape index: {}]  }
   0x1   :  { %13 = vsyncpa [#allocation6], 0 }
   0x2   :  { %14 = vsyncpa [#allocation9], 0 }
   0x3   :  { %15 = vsyncpa [#allocation12], 0  ;;  %s32_s26 = sshll.u32 %s2231_s1, 4  ;;  %s33_s26 = int_to_ptr.hbm [resolvable:$true] %s32_s26 }
   0x4   :  { %16 = vsyncpa [#allocation4], 0  ;;  %s2116_s27 = smov [#allocation5]   ;;  %s59_s8 = sshll.u32 %s2234_s4, 4  ;;  %s60_s8 = int_to_ptr.hbm [resolvable:$true] %s59_s8 }
   0x5   :  { %s34_s28 = sshll.u32 %s2116_s27, 4  ;;  %s2117_s9 = smov 128   ;;  %s35_s28 = int_to_ptr.vmem [resolvable:$true] %s34_s28 }
   0x6   :  { %s2118_s10 = smov 8   ;;  %s2119_s11 = smov [#allocation8]  }
   0x7   :  { %40 = dma.hbm_to_vmem [thread:$0]  %s33_s26, 2048, %s35_s28, [#allocation6], %s2117_s9, %s2117_s9, %s2118_s10  }
   0x8   :  { %s61_s12 = sshll.u32 %s2119_s11, 4  ;;  %s22_s15 = sshll.u32 %s2230_s0, 4  ;;  %s62_s12 = int_to_ptr.vmem [resolvable:$true] %s61_s12  ;;  %s23_s15 = int_to_ptr.hbm [resolvable:$true] %s22_s15 }
   0x9   :  { %64 = dma.hbm_to_vmem [thread:$0]  %s60_s8, 32, %s62_s12, [#allocation9]  }
   0xa   :  { %s46_s17 = sshll.u32 %s2232_s2, 4  ;;  %s2120_s18 = smov [#allocation2]   ;;  %s47_s17 = int_to_ptr.hbm [resolvable:$true] %s46_s17 }
   0xb   :  { %s24_s19 = sshll.u32 %s2120_s18, 4  ;;  %s2121_s4 = smov [#allocation7]   ;;  %s25_s19 = int_to_ptr.vmem [resolvable:$true] %s24_s19 }
   0xc   :  { %27 = dma.hbm_to_vmem [thread:$0]  %s23_s15, 64, %s25_s19, [#allocation3]  }
   0xd   :  { %s48_s20 = sshll.u32 %s2121_s4, 4  ;;  %s69_s23 = sshll.u32 %s2235_s5, 4  ;;  %s49_s20 = int_to_ptr.vmem [resolvable:$true] %s48_s20  ;;  %s70_s23 = int_to_ptr.hbm [resolvable:$true] %s69_s23 }
   0xe   :  { %51 = dma.hbm_to_vmem [thread:$0]  %s47_s17, 32, %s49_s20, [#allocation6]  }
   0xf   :  { %s2122_s0 = smov [#allocation10]   ;;  %s83_s2 = sshll.u32 %s2236_s6, 4  ;;  %s84_s2 = int_to_ptr.hbm [resolvable:$true] %s83_s2 }
  0x10   :  { %s71_s24 = sshll.u32 %s2122_s0, 4  ;;  %s2123_s27 = smov 448   ;;  %s72_s24 = int_to_ptr.vmem [resolvable:$true] %s71_s24 }
  0x11   :  { %s2124_s28 = smov 28   ;;  %s2125_s29 = smov [#allocation11]  }
  0x12   :  { %77 = dma.hbm_to_vmem [thread:$0]  %s70_s23, 14336, %s72_s24, [#allocation9], %s2123_s27, %s2123_s27, %s2124_s28  }
  0x13   :  { %s85_s30 = sshll.u32 %s2125_s29, 4  ;;  %s86_s30 = int_to_ptr.vmem [resolvable:$true] %s85_s30 }
  0x14   :  { %88 = dma.hbm_to_vmem [thread:$0]  %s84_s2, 112, %s86_s30, [#allocation12]  }
  0x15   :  { %2106 = dma.done.wait [#allocation3], 64  }
  0x16   :  { %2107 = vsyncadd [#allocation3], 4294967232 }
  0x17   :  { %2108 = dma.done.wait [#allocation6], 2080  }
  0x18   :  { %2109 = vsyncadd [#allocation6], 4294965216 }
  0x19   :  { %2110 = dma.done.wait [#allocation9], 14368  }
  0x1a   :  { %2111 = vsyncadd [#allocation9], 4294952928 }
  0x1b   :  { %2112 = dma.done.wait [#allocation12], 112  }
  0x1c   :  { %2113 = vsyncadd [#allocation12], 4294967184  ;;  %v1315_v0 = vld [vmem:[#allocation5 + $0x70] sm:$0xf]  ;;  %v1784_v1 = vld [vmem:[#allocation5 + $0x74] sm:$0xf0] }
  0x1d   :  { %v1783_v2 = vld [vmem:[#allocation5 + $0x74] sm:$0xf]  ;;  %v1316_v3 = vor.u32 %v1784_v1, %v1315_v0  ;;  %v1317_v4 = vld [vmem:[#allocation5 + $0x78] sm:$0xf0]  ;;  %v1307_v5 = vld [vmem:[#allocation5 + $0x60] sm:$0xf] }
  0x1e   :  { %v1782_v6 = vld [vmem:[#allocation5 + $0x64] sm:$0xf0]  ;;  %v1320_v7 = vor.u32 %v1783_v2, %v1317_v4  ;;  %v1781_v8 = vld [vmem:[#allocation5 + $0x64] sm:$0xf]  ;;  %v1309_v9 = vld [vmem:[#allocation5 + $0x68] sm:$0xf0] }
  0x1f   :  { %216 = vmatpush.bf16.msra.mxu0 %v1316_v3  ;;  %v1308_v10 = vor.u32 %v1782_v6, %v1307_v5  ;;  %v1312_v11 = vor.u32 %v1781_v8, %v1309_v9  ;;  %v1299_v12 = vld [vmem:[#allocation5 + $0x50] sm:$0xf]  ;;  %v1780_v13 = vld [vmem:[#allocation5 + $0x54] sm:$0xf0]  ;;  %v1779_v14 = vld [vmem:[#allocation5 + $0x54] sm:$0xf] }
  0x20   :  { %229 = vmatpush.bf16.msra.mxu1 %v1320_v7  ;;  %v1301_v15 = vld [vmem:[#allocation5 + $0x58] sm:$0xf0]  ;;  %v1300_v16 = vor.u32 %v1780_v13, %v1299_v12  ;;  %v1291_v18 = vld [vmem:[#allocation5 + $0x40] sm:$0xf]  ;;  %v1778_v19 = vld [vmem:[#allocation5 + $0x44] sm:$0xf0] }
  0x21   :  { %v1304_v17 = vor.u32 %v1779_v14, %v1301_v15  ;;  %v1777_v20 = vld [vmem:[#allocation5 + $0x44] sm:$0xf]  ;;  %v1293_v21 = vld [vmem:[#allocation5 + $0x48] sm:$0xf0]  ;;  %v1292_v22 = vor.u32 %v1778_v19, %v1291_v18  ;;  %v1283_v24 = vld [vmem:[#allocation5 + $0x30] sm:$0xf] }
  0x22   :  { %v1296_v23 = vor.u32 %v1777_v20, %v1293_v21  ;;  %v1776_v25 = vld [vmem:[#allocation5 + $0x34] sm:$0xf0]  ;;  %v1775_v26 = vld [vmem:[#allocation5 + $0x34] sm:$0xf]  ;;  %v1285_v27 = vld [vmem:[#allocation5 + $0x38] sm:$0xf0] }
  0x23   :  { %217 = vmatpush.bf16.msra.mxu0 %v1308_v10  ;;  %v1284_v28 = vor.u32 %v1776_v25, %v1283_v24  ;;  %v1288_v29 = vor.u32 %v1775_v26, %v1285_v27  ;;  %v1275_v30 = vld [vmem:[#allocation5 + $0x20] sm:$0xf]  ;;  %v1774_v31 = vld [vmem:[#allocation5 + $0x24] sm:$0xf0]  ;;  %v1773_v32 = vld [vmem:[#allocation5 + $0x24] sm:$0xf] }
  0x24   :  { %230 = vmatpush.bf16.msra.mxu1 %v1312_v11  ;;  %v1277_v33 = vld [vmem:[#allocation5 + $0x28] sm:$0xf0]  ;;  %v1276_v34 = vor.u32 %v1774_v31, %v1275_v30  ;;  %v1267_v36 = vld [vmem:[#allocation5 + $0x10] sm:$0xf]  ;;  %v1772_v37 = vld [vmem:[#allocation5 + $0x14] sm:$0xf0] }
  0x25   :  { %v1280_v35 = vor.u32 %v1773_v32, %v1277_v33  ;;  %v1771_v38 = vld [vmem:[#allocation5 + $0x14] sm:$0xf]  ;;  %v1269_v39 = vld [vmem:[#allocation5 + $0x18] sm:$0xf0]  ;;  %v1268_v40 = vor.u32 %v1772_v37, %v1267_v36  ;;  %v1259_v42 = vld [vmem:[#allocation5] sm:$0xf] }
  0x26   :  { %v1272_v41 = vor.u32 %v1771_v38, %v1269_v39  ;;  %v1770_v43 = vld [vmem:[#allocation5 + $0x4] sm:$0xf0]  ;;  %v1769_v44 = vld [vmem:[#allocation5 + $0x4] sm:$0xf]  ;;  %v1261_v45 = vld [vmem:[#allocation5 + $0x8] sm:$0xf0] }
  0x27   :  { %218 = vmatpush.bf16.msra.mxu0 %v1300_v16  ;;  %v1260_v46 = vor.u32 %v1770_v43, %v1259_v42  ;;  %v1264_v47 = vor.u32 %v1769_v44, %v1261_v45  ;;  %v113_v48 = vld [vmem:[#allocation2] sm:$0xf]  ;;  %v1519_v49 = vld [vmem:[#allocation10 + $0x188] sm:$0xf]  ;;  %v1837_v50 = vld [vmem:[#allocation10 + $0x1a0] sm:$0xf0] }
  0x28   :  { %231 = vmatpush.bf16.msra.mxu1 %v1304_v17  ;;  %v1743_v51 = vld [vmem:[#allocation10 + $0x348] sm:$0xf]  ;;  %v1520_v52 = vor.u32 %v1837_v50, %v1519_v49  ;;  %v1893_v53 = vld [vmem:[#allocation10 + $0x360] sm:$0xf0]  ;;  %v1834_v54 = vld [vmem:[#allocation10 + $0x18c] sm:$0xf] }
  0x29   :  { %v1521_v55 = vld [vmem:[#allocation10 + $0x1a4] sm:$0xf0]  ;;  %v1744_v56 = vor.u32 %v1893_v53, %v1743_v51  ;;  %v1890_v58 = vld [vmem:[#allocation10 + $0x34c] sm:$0xf]  ;;  %v1491_v60 = vld [vmem:[#allocation10 + $0x150] sm:$0xf] }
  0x2a   :  { %v1524_v57 = vor.u32 %v1834_v54, %v1521_v55  ;;  %v1745_v59 = vld [vmem:[#allocation10 + $0x364] sm:$0xf0]  ;;  %1013 = vmatpush.bf16.msra.mxu2 %v1520_v52  ;;  %v1830_v62 = vld [vmem:[#allocation10 + $0x168] sm:$0xf0]  ;;  %v1715_v63 = vld [vmem:[#allocation10 + $0x310] sm:$0xf] }
  0x2b   :  { %219 = vmatpush.bf16.msra.mxu0 %v1292_v22  ;;  %v1748_v61 = vor.u32 %v1890_v58, %v1745_v59  ;;  %v1886_v0 = vld [vmem:[#allocation10 + $0x328] sm:$0xf0]  ;;  %1026 = vmatpush.bf16.msra.mxu3 %v1744_v56  ;;  %v1492_v1 = vor.u32 %v1830_v62, %v1491_v60  ;;  %v1827_v3 = vld [vmem:[#allocation10 + $0x154] sm:$0xf]  ;;  %v1493_v4 = vld [vmem:[#allocation10 + $0x16c] sm:$0xf0] }
  0x2c   :  { %232 = vmatpush.bf16.msra.mxu1 %v1296_v23  ;;  %v1716_v2 = vor.u32 %v1886_v0, %v1715_v63  ;;  %v1883_v5 = vld [vmem:[#allocation10 + $0x314] sm:$0xf]  ;;  %v1496_v6 = vor.u32 %v1827_v3, %v1493_v4  ;;  %v1717_v7 = vld [vmem:[#allocation10 + $0x32c] sm:$0xf0]  ;;  %v1463_v8 = vld [vmem:[#allocation10 + $0x118] sm:$0xf] }
  0x2d   :  { %v1823_v9 = vld [vmem:[#allocation10 + $0x130] sm:$0xf0]  ;;  %v130_v10 = vld [vmem:[#allocation7] sm:$0x3]  ;;  %v1720_v11 = vor.u32 %v1883_v5, %v1717_v7  ;;  %v1687_v12 = vld [vmem:[#allocation10 + $0x2d8] sm:$0xf] }
  0x2e   :  { %v1879_v13 = vld [vmem:[#allocation10 + $0x2f0] sm:$0xf0]  ;;  %v1820_v14 = vld [vmem:[#allocation10 + $0x11c] sm:$0xf]  ;;  %1014 = vmatpush.bf16.msra.mxu2 %v1492_v1  ;;  %v1464_v15 = vor.u32 %v1823_v9, %v1463_v8  ;;  %v1465_v16 = vld [vmem:[#allocation10 + $0x134] sm:$0xf0] }
  0x2f   :  { %220 = vmatpush.bf16.msra.mxu0 %v1284_v28  ;;  %v1876_v17 = vld [vmem:[#allocation10 + $0x2dc] sm:$0xf]  ;;  %v1689_v18 = vld [vmem:[#allocation10 + $0x2f4] sm:$0xf0]  ;;  %1027 = vmatpush.bf16.msra.mxu3 %v1716_v2  ;;  %v1688_v19 = vor.u32 %v1879_v13, %v1687_v12  ;;  %v1468_v20 = vor.u32 %v1820_v14, %v1465_v16  ;;  %v1435_v21 = vld [vmem:[#allocation10 + $0xe0] sm:$0xf] }
  0x30   :  { %233 = vmatpush.bf16.msra.mxu1 %v1288_v29  ;;  %v1816_v22 = vld [vmem:[#allocation10 + $0xf8] sm:$0xf0]  ;;  %v1659_v23 = vld [vmem:[#allocation10 + $0x2a0] sm:$0xf]  ;;  %v1692_v24 = vor.u32 %v1876_v17, %v1689_v18  ;;  %v1813_v26 = vld [vmem:[#allocation10 + $0xe4] sm:$0xf] }
  0x31   :  { %v1872_v25 = vld [vmem:[#allocation10 + $0x2b8] sm:$0xf0]  ;;  %v1437_v27 = vld [vmem:[#allocation10 + $0xfc] sm:$0xf0]  ;;  %v1869_v28 = vld [vmem:[#allocation10 + $0x2a4] sm:$0xf]  ;;  %v1436_v32 = vor.u32 %v1816_v22, %v1435_v21 }
  0x32   :  { %v1661_v29 = vld [vmem:[#allocation10 + $0x2bc] sm:$0xf0]  ;;  %v132_v30 = vperm.slane %v130_v10, 0  ;;  %v133_v31 = vperm.slane %v130_v10, 1  ;;  %1015 = vmatpush.bf16.msra.mxu2 %v1464_v15  ;;  %v1660_v33 = vor.u32 %v1872_v25, %v1659_v23  ;;  %v1809_v36 = vld [vmem:[#allocation10 + $0xc0] sm:$0xf0] }
  0x33   :  { %221 = vmatpush.bf16.msra.mxu0 %v1276_v34  ;;  %1028 = vmatpush.bf16.msra.mxu3 %v1688_v19  ;;  %v1440_v34 = vor.u32 %v1813_v26, %v1437_v27  ;;  %v1631_v37 = vld [vmem:[#allocation10 + $0x268] sm:$0xf]  ;;  %v1664_v38 = vor.u32 %v1869_v28, %v1661_v29  ;;  %v1865_v39 = vld [vmem:[#allocation10 + $0x280] sm:$0xf0]  ;;  %v1862_v42 = vld [vmem:[#allocation10 + $0x26c] sm:$0xf] }
  0x34   :  { %234 = vmatpush.bf16.msra.mxu1 %v1280_v35  ;;  %v1407_v35 = vld [vmem:[#allocation10 + $0xa8] sm:$0xf]  ;;  %v1379_v62 = vld [vmem:[#allocation10 + $0x70] sm:$0xf]  ;;  %v1802_v63 = vld [vmem:[#allocation10 + $0x88] sm:$0xf0] }
  0x35   :  { %v1633_v43 = vld [vmem:[#allocation10 + $0x284] sm:$0xf0]  ;;  %v1408_v45 = vor.u32 %v1809_v36, %v1407_v35  ;;  %v1603_v0 = vld [vmem:[#allocation10 + $0x230] sm:$0xf]  ;;  %v1380_v1 = vor.u32 %v1802_v63, %v1379_v62  ;;  %v1858_v2 = vld [vmem:[#allocation10 + $0x248] sm:$0xf0] }
  0x36   :  { %1016 = vmatpush.bf16.msra.mxu2 %v1436_v32  ;;  %v1636_v51 = vor.u32 %v1862_v42, %v1633_v43  ;;  %v1799_v3 = vld [vmem:[#allocation10 + $0x74] sm:$0xf]  ;;  %v1381_v4 = vld [vmem:[#allocation10 + $0x8c] sm:$0xf0]  ;;  %v1604_v5 = vor.u32 %v1858_v2, %v1603_v0  ;;  %v1351_v10 = vld [vmem:[#allocation10 + $0x38] sm:$0xf] }
  0x37   :  { %222 = vmatpush.bf16.msra.mxu0 %v1268_v40  ;;  %v1806_v40 = vld [vmem:[#allocation10 + $0xac] sm:$0xf]  ;;  %1029 = vmatpush.bf16.msra.mxu3 %v1660_v33  ;;  %v1855_v7 = vld [vmem:[#allocation10 + $0x234] sm:$0xf]  ;;  %v1605_v8 = vld [vmem:[#allocation10 + $0x24c] sm:$0xf0] }
  0x38   :  { %235 = vmatpush.bf16.msra.mxu1 %v1272_v41  ;;  %v1409_v41 = vld [vmem:[#allocation10 + $0xc4] sm:$0xf0]  ;;  %v1608_v9 = vor.u32 %v1855_v7, %v1605_v8  ;;  %v1575_v12 = vld [vmem:[#allocation10 + $0x1f8] sm:$0xf]  ;;  %v1851_v14 = vld [vmem:[#allocation10 + $0x210] sm:$0xf0] }
  0x39   :  { %v1412_v49 = vor.u32 %v1806_v40, %v1409_v41  ;;  %v1792_v15 = vld [vmem:[#allocation10 + $0x3c] sm:$0xf]  ;;  %v1353_v16 = vld [vmem:[#allocation10 + $0x54] sm:$0xf0]  ;;  %v1576_v17 = vor.u32 %v1851_v14, %v1575_v12  ;;  %v1323_v22 = vld [vmem:[#allocation10] sm:$0xf] }
  0x3a   :  { %1017 = vmatpush.bf16.msra.mxu2 %v1408_v45  ;;  %v1356_v18 = vor.u32 %v1792_v15, %v1353_v16  ;;  %v1848_v19 = vld [vmem:[#allocation10 + $0x1fc] sm:$0xf]  ;;  %v1785_v27 = vld [vmem:[#allocation10 + $0x4] sm:$0xf]  ;;  %v1325_v28 = vld [vmem:[#allocation10 + $0x1c] sm:$0xf0] }
  0x3b   :  { %223 = vmatpush.bf16.msra.mxu0 %v1260_v46  ;;  %v1788_v23 = vld [vmem:[#allocation10 + $0x18] sm:$0xf0]  ;;  %v1549_v32 = vld [vmem:[#allocation10 + $0x1dc] sm:$0xf0]  ;;  %v1527_v33 = vld [vmem:[#allocation10 + $0x190] sm:$0xf] }
  0x3c   :  { %236 = vmatpush.bf16.msra.mxu1 %v1264_v47  ;;  %v1324_v25 = vor.u32 %v1788_v23, %v1323_v22  ;;  %v1844_v26 = vld [vmem:[#allocation10 + $0x1d8] sm:$0xf0]  ;;  %v1838_v35 = vld [vmem:[#allocation10 + $0x1a8] sm:$0xf0]  ;;  %v1751_v36 = vld [vmem:[#allocation10 + $0x350] sm:$0xf] }
  0x3d   :  { %v1835_v40 = vld [vmem:[#allocation10 + $0x194] sm:$0xf]  ;;  %v1529_v41 = vld [vmem:[#allocation10 + $0x1ac] sm:$0xf0]  ;;  %v1499_v45 = vld [vmem:[#allocation10 + $0x158] sm:$0xf] }
  0x3e   :  { %224 = vmatmul.bf16.vlgmr.msra.gmra.mxu0 %v113_v48  ;;  %1018 = vmatpush.bf16.msra.mxu2 %v1380_v1  ;;  %v1891_v42 = vld [vmem:[#allocation10 + $0x354] sm:$0xf]  ;;  %v1532_v43 = vor.u32 %v1835_v40, %v1529_v41  ;;  %v1695_v62 = vld [vmem:[#allocation10 + $0x2e0] sm:$0xf]  ;;  %v1880_v0 = vld [vmem:[#allocation10 + $0x2f8] sm:$0xf0] }
  0x3f   :  { %237 = vmatmul.bf16.vlgmr.msra.gmra.mxu1 %v113_v48  ;;  %1039 = vmatpush.bf16.msrb.mxu0 %v1524_v57  ;;  %v1632_v48 = vor.u32 %v1865_v39, %v1631_v37  ;;  %v1894_v37 = vld [vmem:[#allocation10 + $0x368] sm:$0xf0]  ;;  %v1821_v1 = vld [vmem:[#allocation10 + $0x124] sm:$0xf]  ;;  %v1473_v2 = vld [vmem:[#allocation10 + $0x13c] sm:$0xf0] }
  0x40   :  { %1052 = vmatpush.bf16.msrb.mxu1 %v1748_v61  ;;  %v1752_v39 = vor.u32 %v1894_v37, %v1751_v36  ;;  %v1443_v8 = vld [vmem:[#allocation10 + $0xe8] sm:$0xf]  ;;  %v1873_v12 = vld [vmem:[#allocation10 + $0x2c0] sm:$0xf0]  ;;  %v1639_v22 = vld [vmem:[#allocation10 + $0x270] sm:$0xf] }
  0x41   :  { %1030 = vmatpush.bf16.msra.mxu3 %v1632_v48  ;;  %v1445_v14 = vld [vmem:[#allocation10 + $0x104] sm:$0xf0]  ;;  %v1859_v36 = vld [vmem:[#allocation10 + $0x250] sm:$0xf0]  ;;  %v1800_v37 = vld [vmem:[#allocation10 + $0x7c] sm:$0xf] }
  0x42   :  { %v1856_v41 = vld [vmem:[#allocation10 + $0x23c] sm:$0xf]  ;;  %s1244_s11 = sshll.u32 %s2237_s7, 4  ;;  %s1245_s11 = int_to_ptr.hbm [resolvable:$true] %s1244_s11 }
  0x43   :  { %1040 = vmatpush.bf16.msrb.mxu0 %v1496_v6  ;;  %v1384_v6 = vor.u32 %v1799_v3, %v1381_v4  ;;  %v1696_v3 = vor.u32 %v1880_v0, %v1695_v62  ;;  %v1476_v4 = vor.u32 %v1821_v1, %v1473_v2  ;;  %v1555_v62 = vld [vmem:[#allocation10 + $0x1c8] sm:$0xf]  ;;  %v1845_v0 = vld [vmem:[#allocation10 + $0x1e0] sm:$0xf0]  ;;  %v1786_v2 = vld [vmem:[#allocation10 + $0xc] sm:$0xf] }
  0x44   :  { %1053 = vmatpush.bf16.msrb.mxu1 %v1720_v11  ;;  %v1795_v11 = vld [vmem:[#allocation10 + $0x50] sm:$0xf0]  ;;  %v1556_v1 = vor.u32 %v1845_v0, %v1555_v62  ;;  %v1703_v62 = vld [vmem:[#allocation10 + $0x2e8] sm:$0xf]  ;;  %v1822_v0 = vld [vmem:[#allocation10 + $0x12c] sm:$0xf] }
  0x45   :  { %1031 = vmatpush.bf16.msra.mxu3 %v1604_v5  ;;  %v1352_v13 = vor.u32 %v1795_v11, %v1351_v10  ;;  %v1877_v5 = vld [vmem:[#allocation10 + $0x2e4] sm:$0xf]  ;;  %v1667_v10 = vld [vmem:[#allocation10 + $0x2a8] sm:$0xf] }
  0x46   :  { %v1668_v15 = vor.u32 %v1873_v12, %v1667_v10 }
  0x47   :  { %1041 = vmatpush.bf16.msrb.mxu0 %v1468_v20  ;;  %v1577_v20 = vld [vmem:[#allocation10 + $0x214] sm:$0xf0]  ;;  %1019 = vmatpush.bf16.msra.mxu2 %v1352_v13  ;;  %v1814_v13 = vld [vmem:[#allocation10 + $0xec] sm:$0xf] }
  0x48   :  { %1054 = vmatpush.bf16.msrb.mxu1 %v1692_v24  ;;  %v1580_v21 = vor.u32 %v1848_v19, %v1577_v20  ;;  %v1547_v24 = vld [vmem:[#allocation10 + $0x1c0] sm:$0xf]  ;;  %v1448_v16 = vor.u32 %v1814_v13, %v1445_v14  ;;  %v1415_v20 = vld [vmem:[#allocation10 + $0xb0] sm:$0xf] }
  0x49   :  { %1032 = vmatpush.bf16.msra.mxu3 %v1576_v17  ;;  %v1548_v29 = vor.u32 %v1844_v26, %v1547_v24  ;;  %v1870_v17 = vld [vmem:[#allocation10 + $0x2ac] sm:$0xf]  ;;  %v1417_v26 = vld [vmem:[#allocation10 + $0xcc] sm:$0xf0] }
  0x4a   :  { %v1866_v24 = vld [vmem:[#allocation10 + $0x288] sm:$0xf0] }
  0x4b   :  { %1042 = vmatpush.bf16.msrb.mxu0 %v1440_v34  ;;  %1020 = vmatpush.bf16.msra.mxu2 %v1324_v25  ;;  %v1807_v25 = vld [vmem:[#allocation10 + $0xb4] sm:$0xf] }
  0x4c   :  { %1055 = vmatpush.bf16.msrb.mxu1 %v1664_v38  ;;  %v1528_v38 = vor.u32 %v1838_v35, %v1527_v33  ;;  %v1803_v33 = vld [vmem:[#allocation10 + $0x90] sm:$0xf0] }
  0x4d   :  { %1033 = vmatpush.bf16.msra.mxu3 %v1548_v29  ;;  %v1863_v29 = vld [vmem:[#allocation10 + $0x274] sm:$0xf] }
  0x4f   :  { %1043 = vmatpush.bf16.msrb.mxu0 %v1412_v49  ;;  %1065 = vmatpush.bf16.msrb.mxu2 %v1528_v38  ;;  %v1723_v49 = vld [vmem:[#allocation10 + $0x318] sm:$0xf] }
  0x50   :  { %1056 = vmatpush.bf16.msrb.mxu1 %v1636_v51  ;;  %v1828_v51 = vld [vmem:[#allocation10 + $0x15c] sm:$0xf]  ;;  %v1389_v38 = vld [vmem:[#allocation10 + $0x94] sm:$0xf0] }
  0x51   :  { %1078 = vmatpush.bf16.msrb.mxu3 %v1752_v39  ;;  %v1392_v40 = vor.u32 %v1800_v37, %v1389_v38 }
  0x53   :  { %1044 = vmatpush.bf16.msrb.mxu0 %v1384_v6  ;;  %v1697_v6 = vld [vmem:[#allocation10 + $0x2fc] sm:$0xf0] }
  0x54   :  { %1057 = vmatpush.bf16.msrb.mxu1 %v1608_v9  ;;  %v1700_v7 = vor.u32 %v1877_v5, %v1697_v6  ;;  %v1817_v9 = vld [vmem:[#allocation10 + $0x100] sm:$0xf0] }
  0x55   :  { %v1444_v11 = vor.u32 %v1817_v9, %v1443_v8 }
  0x57   :  { %1045 = vmatpush.bf16.msrb.mxu0 %v1356_v18  ;;  %v1669_v18 = vld [vmem:[#allocation10 + $0x2c4] sm:$0xf0] }
  0x58   :  { %1058 = vmatpush.bf16.msrb.mxu1 %v1580_v21  ;;  %v1672_v19 = vor.u32 %v1870_v17, %v1669_v18  ;;  %v1810_v21 = vld [vmem:[#allocation10 + $0xc8] sm:$0xf0]  ;;  %v275_v17 = vld [vmem:[%s2233_s3] sm:$0x3]  ;;  %s2126_s3 = smov [#allocation13]  }
  0x59   :  { %v1416_v23 = vor.u32 %v1810_v21, %v1415_v20  ;;  %s1242_s8 = sshll.u32 %s2126_s3, 4  ;;  %s1243_s8 = int_to_ptr.vmem [resolvable:$true] %s1242_s8 }
  0xbb   :  { %v225_v44 = vpop.f32.mrf.mxu0 }
  0xbc   :  { %v226_v46 = vadd.f32 %v225_v44, %v132_v30  ;;  %v238_v47 = vpop.f32.mrf.mxu1  ;;  %v1328_v30 = vor.u32 %v1785_v27, %v1325_v28  ;;  %v1753_v44 = vld [vmem:[#allocation10 + $0x36c] sm:$0xf0]  ;;  %v1640_v27 = vor.u32 %v1866_v24, %v1639_v22  ;;  %v1420_v28 = vor.u32 %v1807_v25, %v1417_v26 }
  0xbd   :  { %v239_v50 = vadd.f32 %v238_v47, %v133_v31  ;;  %v1841_v31 = vld [vmem:[#allocation10 + $0x1c4] sm:$0xf]  ;;  %v1756_v47 = vor.u32 %v1891_v42, %v1753_v44  ;;  %v1613_v42 = vld [vmem:[#allocation10 + $0x254] sm:$0xf0]  ;;  %v278_v24 = vperm.slane %v275_v17, 1 }
  0xbe   :  { %v244_v52 = vmul.f32 0.02, %v226_v46  ;;  %vm242_vm0 = vcmp.ge.f32.partialorder %v226_v46, 0.0  ;;  %v1552_v34 = vor.u32 %v1841_v31, %v1549_v32  ;;  %1046 = vmatpush.bf16.msrb.mxu0 %v1328_v30  ;;  %v1641_v30 = vld [vmem:[#allocation10 + $0x28c] sm:$0xf0]  ;;  %v1616_v44 = vor.u32 %v1856_v41, %v1613_v42 }
  0xbf   :  { %v245_v53 = vmul.f32 0.02, %v239_v50  ;;  %vm243_vm1 = vcmp.ge.f32.partialorder %v239_v50, 0.0  ;;  %v1644_v31 = vor.u32 %v1863_v29, %v1641_v30  ;;  %v1387_v32 = vld [vmem:[#allocation10 + $0x78] sm:$0xf] }
  0xc0   :  { %v2185_v54 = vsel %vm242_vm0, %v226_v46, %v244_v52  ;;  %1059 = vmatpush.bf16.msrb.mxu1 %v1552_v34  ;;  %v1831_v46 = vld [vmem:[#allocation10 + $0x170] sm:$0xf0]  ;;  %v1611_v34 = vld [vmem:[#allocation10 + $0x238] sm:$0xf]  ;;  %v1388_v35 = vor.u32 %v1803_v33, %v1387_v32 }
  0xc1   :  { %v2187_v55 = vsel %vm243_vm1, %v239_v50, %v245_v53  ;;  %v251_v59 = vmul.f32 %v2185_v54, %v2185_v54  ;;  %v1500_v48 = vor.u32 %v1831_v46, %v1499_v45  ;;  %v1887_v50 = vld [vmem:[#allocation10 + $0x330] sm:$0xf0]  ;;  %v1501_v53 = vld [vmem:[#allocation10 + $0x174] sm:$0xf0]  ;;  %v1612_v39 = vor.u32 %v1859_v36, %v1611_v34  ;;  %v1359_v45 = vld [vmem:[#allocation10 + $0x40] sm:$0xf] }
  0xc2   :  { %v248_v56 = vadd.f32 %v2187_v55, %v2185_v54  ;;  %v252_v60 = vmul.f32 %v2187_v55, %v2187_v55  ;;  %1091 = vmatpush.bf16.msra.mxu0 %v1532_v43  ;;  %v1724_v52 = vor.u32 %v1887_v50, %v1723_v49  ;;  %v1796_v46 = vld [vmem:[#allocation10 + $0x58] sm:$0xf0]  ;;  %v1793_v50 = vld [vmem:[#allocation10 + $0x44] sm:$0xf]  ;;  %v1535_v32 = vld [vmem:[#allocation10 + $0x198] sm:$0xf] }
  0xc3   :  { %v227_v57 = vpop.f32.mrf.mxu0  ;;  %1066 = vmatpush.bf16.msrb.mxu2 %v1500_v48  ;;  %v1583_v48 = vld [vmem:[#allocation10 + $0x200] sm:$0xf]  ;;  %v1852_v49 = vld [vmem:[#allocation10 + $0x218] sm:$0xf0]  ;;  %v1839_v33 = vld [vmem:[#allocation10 + $0x1b0] sm:$0xf0] }
  0xc4   :  { %v240_v58 = vpop.f32.mrf.mxu1  ;;  %249 = vadd.xlane.f32.xlu0 %v248_v56  ;;  %v253_v61 = vadd.f32 %v252_v60, %v251_v59  ;;  %v1884_v56 = vld [vmem:[#allocation10 + $0x31c] sm:$0xf]  ;;  %v1725_v57 = vld [vmem:[#allocation10 + $0x334] sm:$0xf0]  ;;  %1104 = vmatpush.bf16.msra.mxu1 %v1756_v47  ;;  %v1471_v60 = vld [vmem:[#allocation10 + $0x120] sm:$0xf]  ;;  %v1360_v47 = vor.u32 %v1796_v46, %v1359_v45  ;;  %v1536_v42 = vor.u32 %v1839_v33, %v1535_v32 }
  0xc5   :  { %v1504_v58 = vor.u32 %v1828_v51, %v1501_v53  ;;  %v1728_v59 = vor.u32 %v1884_v56, %v1725_v57  ;;  %1079 = vmatpush.bf16.msrb.mxu3 %v1724_v52  ;;  %v1584_v51 = vor.u32 %v1852_v49, %v1583_v48  ;;  %v1361_v52 = vld [vmem:[#allocation10 + $0x5c] sm:$0xf0]  ;;  %v1849_v53 = vld [vmem:[#allocation10 + $0x204] sm:$0xf]  ;;  %v1759_v34 = vld [vmem:[#allocation10 + $0x358] sm:$0xf] }
  0xc6   :  { %v1585_v56 = vld [vmem:[#allocation10 + $0x21c] sm:$0xf0]  ;;  %v1836_v36 = vld [vmem:[#allocation10 + $0x19c] sm:$0xf] }
  0xc7   :  { %1092 = vmatpush.bf16.msra.mxu0 %v1504_v58  ;;  %v1364_v58 = vor.u32 %v1793_v50, %v1361_v52  ;;  %v1832_v45 = vld [vmem:[#allocation10 + $0x178] sm:$0xf0]  ;;  %v1731_v48 = vld [vmem:[#allocation10 + $0x320] sm:$0xf]  ;;  %v1829_v50 = vld [vmem:[#allocation10 + $0x164] sm:$0xf] }
  0xc8   :  { %1105 = vmatpush.bf16.msra.mxu1 %v1728_v59  ;;  %v1588_v59 = vor.u32 %v1849_v53, %v1585_v56  ;;  %v1888_v49 = vld [vmem:[#allocation10 + $0x338] sm:$0xf0]  ;;  %v1885_v52 = vld [vmem:[#allocation10 + $0x324] sm:$0xf]  ;;  %v1733_v53 = vld [vmem:[#allocation10 + $0x33c] sm:$0xf0] }
  0xc9   :  { %1080 = vmatpush.bf16.msrb.mxu3 %v1696_v3  ;;  %v1333_v3 = vld [vmem:[#allocation10 + $0x24] sm:$0xf0] }
  0xca   :  { %v1336_v6 = vor.u32 %v1786_v2, %v1333_v3  ;;  %v1878_v2 = vld [vmem:[#allocation10 + $0x2ec] sm:$0xf]  ;;  %v1705_v3 = vld [vmem:[#allocation10 + $0x304] sm:$0xf0] }
  0xcb   :  { %1093 = vmatpush.bf16.msra.mxu0 %v1476_v4  ;;  %v1842_v4 = vld [vmem:[#allocation10 + $0x1cc] sm:$0xf] }
  0xcc   :  { %254 = vadd.xlane.f32.xlu0 %v253_v61  ;;  %v1824_v61 = vld [vmem:[#allocation10 + $0x138] sm:$0xf0]  ;;  %1106 = vmatpush.bf16.msra.mxu1 %v1700_v7  ;;  %v1557_v7 = vld [vmem:[#allocation10 + $0x1e4] sm:$0xf0] }
  0xcd   :  { %v1472_v63 = vor.u32 %v1824_v61, %v1471_v60  ;;  %1081 = vmatpush.bf16.msrb.mxu3 %v1668_v15  ;;  %v1331_v60 = vld [vmem:[#allocation10 + $0x8] sm:$0xf]  ;;  %v1789_v61 = vld [vmem:[#allocation10 + $0x20] sm:$0xf0]  ;;  %v1560_v10 = vor.u32 %v1842_v4, %v1557_v7  ;;  %v1818_v7 = vld [vmem:[#allocation10 + $0x108] sm:$0xf0] }
  0xcf   :  { %1067 = vmatpush.bf16.msrb.mxu2 %v1472_v63  ;;  %1094 = vmatpush.bf16.msra.mxu0 %v1448_v16  ;;  %v1332_v63 = vor.u32 %v1789_v61, %v1331_v60  ;;  %v1736_v61 = vor.u32 %v1885_v52, %v1733_v53 }
  0xd0   :  { %1107 = vmatpush.bf16.msra.mxu1 %v1672_v19  ;;  %v283_v19 = vld [vmem:[#allocation8] sm:$0x3] }
  0xd1   :  { %1082 = vmatpush.bf16.msrb.mxu3 %v1640_v27  ;;  %v285_v26 = vperm.slane %v283_v19, 0  ;;  %v286_v27 = vperm.slane %v283_v19, 1  ;;  %v1811_v19 = vld [vmem:[#allocation10 + $0xd0] sm:$0xf0] }
  0xd3   :  { %1068 = vmatpush.bf16.msrb.mxu2 %v1444_v11  ;;  %1095 = vmatpush.bf16.msra.mxu0 %v1420_v28 }
  0xd4   :  { %1108 = vmatpush.bf16.msra.mxu1 %v1644_v31 }
  0xd5   :  { %1083 = vmatpush.bf16.msrb.mxu3 %v1612_v39  ;;  %v1892_v39 = vld [vmem:[#allocation10 + $0x35c] sm:$0xf] }
  0xd7   :  { %1069 = vmatpush.bf16.msrb.mxu2 %v1416_v23  ;;  %1096 = vmatpush.bf16.msra.mxu0 %v1392_v40  ;;  %v277_v23 = vperm.slane %v275_v17, 0 }
  0xd8   :  { %1109 = vmatpush.bf16.msra.mxu1 %v1616_v44  ;;  %v1507_v44 = vld [vmem:[#allocation10 + $0x160] sm:$0xf] }
  0xd9   :  { %1084 = vmatpush.bf16.msrb.mxu3 %v1584_v51  ;;  %v1509_v51 = vld [vmem:[#allocation10 + $0x17c] sm:$0xf0]  ;;  %v1508_v56 = vor.u32 %v1832_v45, %v1507_v44 }
  0xda   :  { %v1512_v60 = vor.u32 %v1829_v50, %v1509_v51  ;;  %v1850_v50 = vld [vmem:[#allocation10 + $0x20c] sm:$0xf]  ;;  %v1593_v51 = vld [vmem:[#allocation10 + $0x224] sm:$0xf0] }
  0xdb   :  { %1070 = vmatpush.bf16.msrb.mxu2 %v1388_v35  ;;  %1097 = vmatpush.bf16.msra.mxu0 %v1364_v58  ;;  %v1895_v35 = vld [vmem:[#allocation10 + $0x370] sm:$0xf0]  ;;  %v1479_v58 = vld [vmem:[#allocation10 + $0x128] sm:$0xf] }
  0xdc   :  { %1110 = vmatpush.bf16.msra.mxu1 %v1588_v59  ;;  %v1825_v59 = vld [vmem:[#allocation10 + $0x140] sm:$0xf0] }
  0xdd   :  { %1085 = vmatpush.bf16.msrb.mxu3 %v1556_v1  ;;  %v1481_v1 = vld [vmem:[#allocation10 + $0x144] sm:$0xf0]  ;;  %v1480_v4 = vor.u32 %v1825_v59, %v1479_v58  ;;  %v1563_v58 = vld [vmem:[#allocation10 + $0x1d0] sm:$0xf] }
  0xdf   :  { %1071 = vmatpush.bf16.msrb.mxu2 %v1360_v47  ;;  %1098 = vmatpush.bf16.msra.mxu0 %v1336_v6  ;;  %v1451_v6 = vld [vmem:[#allocation10 + $0xf0] sm:$0xf] }
  0xe0   :  { %1111 = vmatpush.bf16.msra.mxu1 %v1560_v10  ;;  %v1675_v10 = vld [vmem:[#allocation10 + $0x2b0] sm:$0xf] }
  0xe3   :  { %1072 = vmatpush.bf16.msrb.mxu2 %v1332_v63  ;;  %v1881_v63 = vld [vmem:[#allocation10 + $0x300] sm:$0xf0] }
 0x137   :  { %v250_v43 = vpop.xlane.xlu0 %249 }
 0x138   :  { %v256_v57 = vmul.f32 0.005, %v250_v43  ;;  %v1760_v43 = vor.u32 %v1895_v35, %v1759_v34  ;;  %v1619_v34 = vld [vmem:[#allocation10 + $0x240] sm:$0xf]  ;;  %v1860_v35 = vld [vmem:[#allocation10 + $0x258] sm:$0xf0] }
 0x13a   :  { %v258_v8 = vmul.f32 %v256_v57, %v256_v57  ;;  %v271_v21 = vsub.f32 %v2185_v54, %v256_v57  ;;  %v272_v22 = vsub.f32 %v2187_v55, %v256_v57  ;;  %v1537_v54 = vld [vmem:[#allocation10 + $0x1b4] sm:$0xf0]  ;;  %v1732_v57 = vor.u32 %v1888_v49, %v1731_v48  ;;  %v1794_v48 = vld [vmem:[#allocation10 + $0x4c] sm:$0xf]  ;;  %v1369_v49 = vld [vmem:[#allocation10 + $0x64] sm:$0xf0] }
 0x13b   :  { %v1761_v55 = vld [vmem:[#allocation10 + $0x374] sm:$0xf0]  ;;  %v1540_v46 = vor.u32 %v1836_v36, %v1537_v54  ;;  %v1801_v36 = vld [vmem:[#allocation10 + $0x84] sm:$0xf]  ;;  %v1621_v54 = vld [vmem:[#allocation10 + $0x25c] sm:$0xf0]  ;;  %v1372_v59 = vor.u32 %v1794_v48, %v1369_v49 }
 0x13c   :  { %v1764_v47 = vor.u32 %v1892_v39, %v1761_v55  ;;  %v1620_v55 = vor.u32 %v1860_v35, %v1619_v34  ;;  %v1347_v48 = vld [vmem:[#allocation10 + $0x18] sm:$0xf]  ;;  %v1791_v49 = vld [vmem:[#allocation10 + $0x30] sm:$0xf0] }
 0x13f   :  { %v255_v5 = vpop.xlane.xlu0 %254 }
 0x140   :  { %v257_v9 = vmul.f32 0.005, %v255_v5  ;;  %v1704_v5 = vor.u32 %v1881_v63, %v1703_v62  ;;  %v1787_v62 = vld [vmem:[#allocation10 + $0x14] sm:$0xf]  ;;  %v1341_v63 = vld [vmem:[#allocation10 + $0x2c] sm:$0xf0] }
 0x142   :  { %v259_v11 = vsub.f32 %v257_v9, %v258_v8  ;;  %v1484_v8 = vor.u32 %v1822_v0, %v1481_v1  ;;  %v1708_v9 = vor.u32 %v1878_v2, %v1705_v3  ;;  %v1843_v0 = vld [vmem:[#allocation10 + $0x1d4] sm:$0xf]  ;;  %v1565_v1 = vld [vmem:[#allocation10 + $0x1ec] sm:$0xf0]  ;;  %v1543_v2 = vld [vmem:[#allocation10 + $0x1a0] sm:$0xf] }
 0x143   :  { %v1840_v3 = vld [vmem:[#allocation10 + $0x1b8] sm:$0xf0] }
 0x144   :  { %v260_v12 = vadd.f32 1e-05, %v259_v11  ;;  %v1874_v11 = vld [vmem:[#allocation10 + $0x2c8] sm:$0xf0] }
 0x145   :  { %v1676_v17 = vor.u32 %v1874_v11, %v1675_v10  ;;  %v1544_v10 = vor.u32 %v1840_v3, %v1543_v2 }
 0x146   :  { %1908 = vrsqrt.f32 %v260_v12  ;;  %vm267_vm3 = vweird.f32 %v260_v12 }
 0x14c   :  { %v1909_v13 = vpop.eup %1908 }
 0x14d   :  { %v262_v14 = vmul.f32 %v1909_v13, %v260_v12  ;;  %vm268_vm2 = vweird.f32 %v1909_v13  ;;  %v1815_v12 = vld [vmem:[#allocation10 + $0xf4] sm:$0xf] }
 0x14e   :  { %vm269_vm4 = vmor %vm267_vm3, %vm268_vm2 }
 0x14f   :  { %v263_v15 = vmul.f32 %v1909_v13, %v262_v14  ;;  %v1871_v14 = vld [vmem:[#allocation10 + $0x2b4] sm:$0xf] }
 0x151   :  { %v264_v16 = vmul.f32 0.5, %v263_v15  ;;  %v1677_v15 = vld [vmem:[#allocation10 + $0x2cc] sm:$0xf0] }
 0x153   :  { %v265_v18 = vsub.f32 1.5, %v264_v16  ;;  %v1452_v16 = vor.u32 %v1818_v7, %v1451_v6 }
 0x155   :  { %v266_v20 = vmul.f32 %v1909_v13, %v265_v18  ;;  %v1423_v18 = vld [vmem:[#allocation10 + $0xb8] sm:$0xf] }
 0x157   :  { %v270_v25 = vsel %vm269_vm4, %v1909_v13, %v266_v20  ;;  %v1453_v13 = vld [vmem:[#allocation10 + $0x10c] sm:$0xf0] }
 0x158   :  { %v273_v28 = vmul.f32 %v271_v21, %v270_v25  ;;  %v274_v29 = vmul.f32 %v272_v22, %v270_v25  ;;  %v1456_v20 = vor.u32 %v1815_v12, %v1453_v13  ;;  %v1680_v21 = vor.u32 %v1871_v14, %v1677_v15  ;;  %v1647_v22 = vld [vmem:[#allocation10 + $0x278] sm:$0xf]  ;;  %v1515_v12 = vld [vmem:[#allocation10 + $0x168] sm:$0xf]  ;;  %v1833_v13 = vld [vmem:[#allocation10 + $0x180] sm:$0xf0] }
 0x159   :  { %v1425_v25 = vld [vmem:[#allocation10 + $0xd4] sm:$0xf0]  ;;  %v1739_v14 = vld [vmem:[#allocation10 + $0x328] sm:$0xf]  ;;  %v1889_v15 = vld [vmem:[#allocation10 + $0x340] sm:$0xf0] }
 0x15a   :  { %v281_v30 = vmul.f32 %v277_v23, %v273_v28  ;;  %v282_v31 = vmul.f32 %v278_v24, %v274_v29  ;;  %v1867_v23 = vld [vmem:[#allocation10 + $0x290] sm:$0xf0]  ;;  %v1808_v24 = vld [vmem:[#allocation10 + $0xbc] sm:$0xf]  ;;  %v1424_v28 = vor.u32 %v1811_v19, %v1423_v18  ;;  %v1487_v18 = vld [vmem:[#allocation10 + $0x130] sm:$0xf] }
 0x15b   :  { %v1648_v29 = vor.u32 %v1867_v23, %v1647_v22  ;;  %v1428_v32 = vor.u32 %v1808_v24, %v1425_v25  ;;  %v1826_v19 = vld [vmem:[#allocation10 + $0x148] sm:$0xf0]  ;;  %v1459_v24 = vld [vmem:[#allocation10 + $0xf8] sm:$0xf]  ;;  %v1819_v25 = vld [vmem:[#allocation10 + $0x110] sm:$0xf0] }
 0x15c   :  { %v289_v37 = vadd.f32 %v285_v26, %v281_v30  ;;  %v290_v38 = vadd.f32 %v286_v27, %v282_v31  ;;  %v1864_v26 = vld [vmem:[#allocation10 + $0x27c] sm:$0xf]  ;;  %v1649_v27 = vld [vmem:[#allocation10 + $0x294] sm:$0xf0]  ;;  %v1395_v30 = vld [vmem:[#allocation10 + $0x80] sm:$0xf]  ;;  %v1488_v22 = vor.u32 %v1826_v19, %v1487_v18 }
 0x15d   :  { %v1804_v31 = vld [vmem:[#allocation10 + $0x98] sm:$0xf0]  ;;  %v1652_v33 = vor.u32 %v1864_v26, %v1649_v27  ;;  %v1683_v26 = vld [vmem:[#allocation10 + $0x2b8] sm:$0xf]  ;;  %v1875_v27 = vld [vmem:[#allocation10 + $0x2d0] sm:$0xf0] }
 0x15e   :  { %v2200_v40 = vpack.c.bf16 %v289_v37, %v289_v37  ;;  %v2202_v41 = vpack.c.bf16 %v290_v38, %v290_v38  ;;  %v1397_v37 = vld [vmem:[#allocation10 + $0x9c] sm:$0xf0]  ;;  %v1857_v38 = vld [vmem:[#allocation10 + $0x244] sm:$0xf]  ;;  %v1396_v39 = vor.u32 %v1804_v31, %v1395_v30  ;;  %v1812_v31 = vld [vmem:[#allocation10 + $0xd8] sm:$0xf0] }
 0x15f   :  { %v1400_v44 = vor.u32 %v1801_v36, %v1397_v37  ;;  %v1624_v45 = vor.u32 %v1857_v38, %v1621_v54  ;;  %v1431_v30 = vld [vmem:[#allocation10 + $0xc0] sm:$0xf]  ;;  %v1403_v36 = vld [vmem:[#allocation10 + $0x88] sm:$0xf]  ;;  %v1805_v37 = vld [vmem:[#allocation10 + $0xa0] sm:$0xf0] }
 0x160   :  { %1021 = vmatmul.bf16.vlgmr.msra.gmra.mxu2 %v2200_v40  ;;  %1034 = vmatmul.bf16.vlgmr.msra.gmra.mxu3 %v2202_v41  ;;  %v1432_v34 = vor.u32 %v1812_v31, %v1431_v30  ;;  %v1627_v38 = vld [vmem:[#allocation10 + $0x248] sm:$0xf]  ;;  %v1861_v54 = vld [vmem:[#allocation10 + $0x260] sm:$0xf0] }
 0x161   :  { %1047 = vmatmul.bf16.vlgmr.msrb.gmra.mxu0 %v2200_v40  ;;  %1060 = vmatmul.bf16.vlgmr.msrb.gmra.mxu1 %v2202_v41 }
 0x162   :  { %1117 = vmatpush.bf16.msra.mxu2 %v1536_v42  ;;  %1130 = vmatpush.bf16.msra.mxu3 %v1760_v43  ;;  %v1367_v42 = vld [vmem:[#allocation10 + $0x48] sm:$0xf]  ;;  %v1797_v43 = vld [vmem:[#allocation10 + $0x60] sm:$0xf0] }
 0x163   :  { %1143 = vmatpush.bf16.msrb.mxu0 %v1540_v46  ;;  %1156 = vmatpush.bf16.msrb.mxu1 %v1764_v47  ;;  %v1591_v46 = vld [vmem:[#allocation10 + $0x208] sm:$0xf]  ;;  %v1853_v47 = vld [vmem:[#allocation10 + $0x220] sm:$0xf0]  ;;  %v1368_v52 = vor.u32 %v1797_v43, %v1367_v42  ;;  %v1375_v42 = vld [vmem:[#allocation10 + $0x50] sm:$0xf] }
 0x164   :  { %v1592_v53 = vor.u32 %v1853_v47, %v1591_v46  ;;  %v1798_v43 = vld [vmem:[#allocation10 + $0x68] sm:$0xf0] }
 0x165   :  { %v1376_v46 = vor.u32 %v1798_v43, %v1375_v42 }
 0x166   :  { %1118 = vmatpush.bf16.msra.mxu2 %v1508_v56  ;;  %1131 = vmatpush.bf16.msra.mxu3 %v1732_v57  ;;  %v1339_v56 = vld [vmem:[#allocation10 + $0x10] sm:$0xf]  ;;  %v1790_v57 = vld [vmem:[#allocation10 + $0x28] sm:$0xf0] }
 0x167   :  { %1144 = vmatpush.bf16.msrb.mxu0 %v1512_v60  ;;  %1157 = vmatpush.bf16.msrb.mxu1 %v1736_v61  ;;  %v1596_v60 = vor.u32 %v1850_v50, %v1593_v51  ;;  %v1846_v61 = vld [vmem:[#allocation10 + $0x1e8] sm:$0xf0]  ;;  %v1340_v6 = vor.u32 %v1790_v57, %v1339_v56  ;;  %v1571_v50 = vld [vmem:[#allocation10 + $0x1d8] sm:$0xf]  ;;  %v1847_v51 = vld [vmem:[#allocation10 + $0x1f0] sm:$0xf0] }
 0x168   :  { %v1564_v7 = vor.u32 %v1846_v61, %v1563_v58  ;;  %v2218_v56 = vld [vmem:[#allocation11] sm:$0xff] }
 0x169   :  { %v424_v57 = vperm.slane %v2218_v56, 1  ;;  %v423_v61 = vperm.slane %v2218_v56, 0 }
 0x16a   :  { %1119 = vmatpush.bf16.msra.mxu2 %v1480_v4  ;;  %1132 = vmatpush.bf16.msra.mxu3 %v1704_v5  ;;  %v1767_v4 = vld [vmem:[#allocation10 + $0x360] sm:$0xf]  ;;  %v1896_v5 = vld [vmem:[#allocation10 + $0x378] sm:$0xf0] }
 0x16b   :  { %1145 = vmatpush.bf16.msrb.mxu0 %v1484_v8  ;;  %1158 = vmatpush.bf16.msrb.mxu1 %v1708_v9  ;;  %v1344_v8 = vor.u32 %v1787_v62, %v1341_v63  ;;  %v1568_v9 = vor.u32 %v1843_v0, %v1565_v1  ;;  %v1768_v11 = vor.u32 %v1896_v5, %v1767_v4 }
 0x16e   :  { %1120 = vmatpush.bf16.msra.mxu2 %v1452_v16  ;;  %1133 = vmatpush.bf16.msra.mxu3 %v1676_v17  ;;  %v1516_v16 = vor.u32 %v1833_v13, %v1515_v12  ;;  %v1740_v17 = vor.u32 %v1889_v15, %v1739_v14  ;;  %v425_v15 = vperm.slane %v2218_v56, 2 }
 0x16f   :  { %1146 = vmatpush.bf16.msrb.mxu0 %v1456_v20  ;;  %1159 = vmatpush.bf16.msrb.mxu1 %v1680_v21  ;;  %v1711_v20 = vld [vmem:[#allocation10 + $0x2f0] sm:$0xf]  ;;  %v1882_v21 = vld [vmem:[#allocation10 + $0x308] sm:$0xf0] }
 0x170   :  { %1073 = vmatmul.bf16.vlgmr.msrb.gmra.mxu2 %v2200_v40  ;;  %1086 = vmatmul.bf16.vlgmr.msrb.gmra.mxu3 %v2202_v41  ;;  %v1712_v23 = vor.u32 %v1882_v21, %v1711_v20 }
 0x171   :  { %1099 = vmatmul.bf16.vlgmr.msra.gmra.mxu0 %v2200_v40  ;;  %1112 = vmatmul.bf16.vlgmr.msra.gmra.mxu1 %v2202_v41 }
 0x172   :  { %1121 = vmatpush.bf16.msra.mxu2 %v1424_v28  ;;  %1134 = vmatpush.bf16.msra.mxu3 %v1648_v29  ;;  %v1460_v28 = vor.u32 %v1819_v25, %v1459_v24  ;;  %v1684_v29 = vor.u32 %v1875_v27, %v1683_v26 }
 0x173   :  { %1147 = vmatpush.bf16.msrb.mxu0 %v1428_v32  ;;  %1160 = vmatpush.bf16.msrb.mxu1 %v1652_v33  ;;  %v1655_v32 = vld [vmem:[#allocation10 + $0x280] sm:$0xf]  ;;  %v1868_v33 = vld [vmem:[#allocation10 + $0x298] sm:$0xf0] }
 0x174   :  { %v1656_v35 = vor.u32 %v1868_v33, %v1655_v32  ;;  %v428_v33 = vperm.slane %v2218_v56, 5 }
 0x176   :  { %1122 = vmatpush.bf16.msra.mxu2 %v1396_v39  ;;  %1135 = vmatpush.bf16.msra.mxu3 %v1620_v55  ;;  %v1404_v39 = vor.u32 %v1805_v37, %v1403_v36  ;;  %v1628_v55 = vor.u32 %v1861_v54, %v1627_v38  ;;  %v427_v54 = vperm.slane %v2218_v56, 4 }
 0x177   :  { %1148 = vmatpush.bf16.msrb.mxu0 %v1400_v44  ;;  %1161 = vmatpush.bf16.msrb.mxu1 %v1624_v45  ;;  %v1599_v44 = vld [vmem:[#allocation10 + $0x210] sm:$0xf]  ;;  %v1854_v45 = vld [vmem:[#allocation10 + $0x228] sm:$0xf0] }
 0x178   :  { %v1600_v47 = vor.u32 %v1854_v45, %v1599_v44 }
 0x17a   :  { %1123 = vmatpush.bf16.msra.mxu2 %v1368_v52  ;;  %1136 = vmatpush.bf16.msra.mxu3 %v1592_v53  ;;  %v1348_v52 = vor.u32 %v1791_v49, %v1347_v48  ;;  %v1572_v53 = vor.u32 %v1847_v51, %v1571_v50 }
 0x17b   :  { %1149 = vmatpush.bf16.msrb.mxu0 %v1372_v59  ;;  %1162 = vmatpush.bf16.msrb.mxu1 %v1596_v60 }
 0x17e   :  { %1124 = vmatpush.bf16.msra.mxu2 %v1340_v6  ;;  %1137 = vmatpush.bf16.msra.mxu3 %v1564_v7 }
 0x17f   :  { %1150 = vmatpush.bf16.msrb.mxu0 %v1344_v8  ;;  %1163 = vmatpush.bf16.msrb.mxu1 %v1568_v9  ;;  %v426_v9 = vperm.slane %v2218_v56, 3 }
 0x181   :  { %1125 = vmatmul.bf16.vlgmr.msra.gmra.mxu2 %v2200_v40  ;;  %1138 = vmatmul.bf16.vlgmr.msra.gmra.mxu3 %v2202_v41 }
 0x182   :  { %1169 = vmatpush.bf16.msrb.mxu2 %v1544_v10  ;;  %1182 = vmatpush.bf16.msrb.mxu3 %v1768_v11 }
 0x183   :  { %1151 = vmatmul.bf16.vlgmr.msrb.gmra.mxu0 %v2200_v40  ;;  %1164 = vmatmul.bf16.vlgmr.msrb.gmra.mxu1 %v2202_v41 }
 0x186   :  { %1170 = vmatpush.bf16.msrb.mxu2 %v1516_v16  ;;  %1183 = vmatpush.bf16.msrb.mxu3 %v1740_v17 }
 0x18a   :  { %1171 = vmatpush.bf16.msrb.mxu2 %v1488_v22  ;;  %1184 = vmatpush.bf16.msrb.mxu3 %v1712_v23 }
 0x18e   :  { %1172 = vmatpush.bf16.msrb.mxu2 %v1460_v28  ;;  %1185 = vmatpush.bf16.msrb.mxu3 %v1684_v29 }
 0x192   :  { %1173 = vmatpush.bf16.msrb.mxu2 %v1432_v34  ;;  %1186 = vmatpush.bf16.msrb.mxu3 %v1656_v35 }
 0x196   :  { %1174 = vmatpush.bf16.msrb.mxu2 %v1404_v39  ;;  %1187 = vmatpush.bf16.msrb.mxu3 %v1628_v55 }
 0x19a   :  { %1175 = vmatpush.bf16.msrb.mxu2 %v1376_v46  ;;  %1188 = vmatpush.bf16.msrb.mxu3 %v1600_v47 }
 0x19e   :  { %1176 = vmatpush.bf16.msrb.mxu2 %v1348_v52  ;;  %1189 = vmatpush.bf16.msrb.mxu3 %v1572_v53 }
 0x1a1   :  { %1177 = vmatmul.bf16.vlgmr.msrb.gmra.mxu2 %v2200_v40  ;;  %1190 = vmatmul.bf16.vlgmr.msrb.gmra.mxu3 %v2202_v41 }
 0x1de   :  { %v1048_v58 = vpop.f32.mrf.mxu0  ;;  %v1061_v59 = vpop.f32.mrf.mxu1 }
 0x1df   :  { %v1049_v60 = vadd.f32 %v1048_v58, %v424_v57 }
 0x1e1   :  { %v1062_v62 = vadd.f32 %v1061_v59, %v1049_v60 }
 0x1e3   :  { %v1196_v63 = vsub.f32 0.0, %v1062_v62  ;;  %v1022_v0 = vpop.f32.mrf.mxu2  ;;  %v1035_v1 = vpop.f32.mrf.mxu3 }
 0x1e4   :  { %v1023_v2 = vadd.f32 %v1022_v0, %v423_v61 }
 0x1e5   :  { %v1204_v3 = vmul.f32 1.442695, %v1196_v63 }
 0x1e6   :  { %v1036_v4 = vadd.f32 %v1035_v1, %v1023_v2  ;;  %v1050_v5 = vpop.f32.mrf.mxu0  ;;  %v1063_v40 = vpop.f32.mrf.mxu1  ;;  %v429_v2 = vperm.slane %v2218_v56, 6 }
 0x1e7   :  { %1910 = vpow2.f32 %v1204_v3 }
 0x1e8   :  { %v1195_v41 = vsub.f32 0.0, %v1036_v4 }
 0x1ea   :  { %v1202_v6 = vmul.f32 1.442695, %v1195_v41 }
 0x1eb   :  { %v1024_v7 = vpop.f32.mrf.mxu2  ;;  %v1037_v8 = vpop.f32.mrf.mxu3 }
 0x1ec   :  { %1912 = vpow2.f32 %v1202_v6 }
 0x1ed   :  { %v1911_v10 = vpop.eup %1910 }
 0x1ee   :  { %v1217_v11 = vadd.f32 1.0, %v1911_v10  ;;  %v1100_v12 = vpop.f32.mrf.mxu0  ;;  %v1113_v13 = vpop.f32.mrf.mxu1 }
 0x1ef   :  { %v1101_v14 = vadd.f32 %v1100_v12, %v426_v9 }
 0x1f0   :  { %1914 = vrcp.f32 %v1217_v11 }
 0x1f1   :  { %v1114_v16 = vadd.f32 %v1113_v13, %v1101_v14 }
 0x1f2   :  { %v1913_v17 = vpop.eup %1912 }
 0x1f3   :  { %v1216_v18 = vadd.f32 1.0, %v1913_v17  ;;  %v1198_v19 = vsub.f32 0.0, %v1114_v16  ;;  %v1074_v20 = vpop.f32.mrf.mxu2  ;;  %v1087_v21 = vpop.f32.mrf.mxu3 }
 0x1f4   :  { %v1075_v22 = vadd.f32 %v1074_v20, %v425_v15 }
 0x1f5   :  { %1916 = vrcp.f32 %v1216_v18  ;;  %v1208_v23 = vmul.f32 1.442695, %v1198_v19 }
 0x1f6   :  { %v1915_v24 = vpop.eup %1914  ;;  %v1088_v25 = vadd.f32 %v1087_v21, %v1075_v22  ;;  %v1102_v26 = vpop.f32.mrf.mxu0 }
 0x1f7   :  { %v1115_v27 = vpop.f32.mrf.mxu1  ;;  %1231 = vst [vmem:[#allocation13 + $0x8] sm:$0xff] %v1915_v24  ;;  %1918 = vpow2.f32 %v1208_v23 }
 0x1f8   :  { %v1197_v28 = vsub.f32 0.0, %v1088_v25 }
 0x1fa   :  { %v1206_v29 = vmul.f32 1.442695, %v1197_v28 }
 0x1fb   :  { %v1917_v30 = vpop.eup %1916  ;;  %v1076_v31 = vpop.f32.mrf.mxu2 }
 0x1fc   :  { %v1089_v32 = vpop.f32.mrf.mxu3  ;;  %1230 = vst [vmem:[#allocation13] sm:$0xff] %v1917_v30  ;;  %1920 = vpow2.f32 %v1206_v29 }
 0x1fd   :  { %v1919_v34 = vpop.eup %1918 }
 0x1fe   :  { %v1219_v35 = vadd.f32 1.0, %v1919_v34 }
 0x200   :  { %v1152_v36 = vpop.f32.mrf.mxu0  ;;  %v1165_v37 = vpop.f32.mrf.mxu1  ;;  %1922 = vrcp.f32 %v1219_v35 }
 0x201   :  { %v1153_v38 = vadd.f32 %v1152_v36, %v428_v33 }
 0x202   :  { %v1921_v39 = vpop.eup %1920 }
 0x203   :  { %v1166_v55 = vadd.f32 %v1165_v37, %v1153_v38  ;;  %v1218_v42 = vadd.f32 1.0, %v1921_v39 }
 0x204   :  { %v1126_v44 = vpop.f32.mrf.mxu2  ;;  %v1139_v45 = vpop.f32.mrf.mxu3 }
 0x205   :  { %v1200_v43 = vsub.f32 0.0, %v1166_v55  ;;  %1924 = vrcp.f32 %v1218_v42  ;;  %v1127_v46 = vadd.f32 %v1126_v44, %v427_v54 }
 0x206   :  { %v1923_v47 = vpop.eup %1922 }
 0x207   :  { %v1212_v48 = vmul.f32 1.442695, %v1200_v43  ;;  %1233 = vst [vmem:[#allocation13 + $0x18] sm:$0xff] %v1923_v47  ;;  %v1140_v49 = vadd.f32 %v1139_v45, %v1127_v46 }
 0x208   :  { %v1154_v50 = vpop.f32.mrf.mxu0  ;;  %v1167_v51 = vpop.f32.mrf.mxu1 }
 0x209   :  { %1926 = vpow2.f32 %v1212_v48  ;;  %v1199_v52 = vsub.f32 0.0, %v1140_v49 }
 0x20b   :  { %v1925_v53 = vpop.eup %1924  ;;  %v1210_v57 = vmul.f32 1.442695, %v1199_v52 }
 0x20c   :  { %1232 = vst [vmem:[#allocation13 + $0x10] sm:$0xff] %v1925_v53  ;;  %v1128_v58 = vpop.f32.mrf.mxu2  ;;  %v1141_v59 = vpop.f32.mrf.mxu3 }
 0x20d   :  { %1928 = vpow2.f32 %v1210_v57 }
 0x20f   :  { %v1927_v60 = vpop.eup %1926 }
 0x210   :  { %v1221_v61 = vadd.f32 1.0, %v1927_v60 }
 0x212   :  { %1930 = vrcp.f32 %v1221_v61 }
 0x213   :  { %v1929_v62 = vpop.eup %1928 }
 0x214   :  { %v1220_v63 = vadd.f32 1.0, %v1929_v62 }
 0x216   :  { %1932 = vrcp.f32 %v1220_v63 }
 0x218   :  { %v1931_v0 = vpop.eup %1930 }
 0x219   :  { %1235 = vst [vmem:[#allocation13 + $0x28] sm:$0xff] %v1931_v0 }
 0x21c   :  { %v1933_v1 = vpop.eup %1932 }
 0x21d   :  { %1234 = vst [vmem:[#allocation13 + $0x20] sm:$0xff] %v1933_v1 }
 0x224   :  { %v1178_v3 = vpop.f32.mrf.mxu2  ;;  %v1191_v4 = vpop.f32.mrf.mxu3 }
 0x225   :  { %v1179_v5 = vadd.f32 %v1178_v3, %v429_v2 }
 0x227   :  { %v1192_v40 = vadd.f32 %v1191_v4, %v1179_v5 }
 0x229   :  { %v1201_v41 = vsub.f32 0.0, %v1192_v40 }
 0x22b   :  { %v1214_v6 = vmul.f32 1.442695, %v1201_v41 }
 0x22c   :  { %v1180_v7 = vpop.f32.mrf.mxu2  ;;  %v1193_v8 = vpop.f32.mrf.mxu3 }
 0x22d   :  { %1934 = vpow2.f32 %v1214_v6 }
 0x233   :  { %v1935_v9 = vpop.eup %1934 }
 0x234   :  { %v1222_v10 = vadd.f32 1.0, %v1935_v9 }
 0x236   :  { %1936 = vrcp.f32 %v1222_v10 }
 0x23c   :  { %v1937_v56 = vpop.eup %1936 }
 0x23d   :  { %1236 = vst [vmem:[#allocation13 + $0x30] sm:$0xff] %v1937_v56 }
 0x23e   :  { %1247 = dma.vmem_to_hbm [thread:$0]  %s1243_s8, 896, %s1245_s11, [#allocation4]  }
 0x23f   :  { %2114 = dma.done.wait [#allocation4], 896  }
 0x240   :  { %2115 = vsyncadd [#allocation4], 4294966400 }
 0x241   :  { %1252 = vsyncpa [#allocation3], 1 }
 0x242   :  { %1253 = vsyncpa [#allocation6], 1 }
 0x243   :  { %1254 = vsyncpa [#allocation9], 1 }
 0x244   :  { %1255 = vsyncpa [#allocation12], 1 }
 0x245   :  { %1256 = vsyncpa [#allocation4], 1 }

</bundles_post_ra>
